<compile_context>
chip_gen: v6e
topology: v6e:2x2x1
jax: 0.10.0
libtpu: 0.0.40
codegen_flags: <defaults>
</compile_context>

<pallas_src>
import jax
import jax.numpy as jnp
from jax.experimental import pallas as pl
from jax.experimental.pallas import tpu as pltpu


def _mlp_kernel(x_ref, w0_ref, b0_ref, w1_ref, b1_ref, w2_ref, b2_ref, o_ref):
    # ---- Layer 0: Linear(2 -> 32) + Tanh --------------------------------
    # Contraction dim is only 2: do it on the VPU with broadcast multiply-adds
    # ([32,1] * [1,tb] -> [32,tb]) rather than wasting an MXU push.
    d_in = x_ref.shape[0]
    acc = w0_ref[:, 0:1] * x_ref[0:1, :]
    for k in range(1, d_in):
        acc = acc + w0_ref[:, k:k + 1] * x_ref[k:k + 1, :]
    h = jnp.tanh(acc + b0_ref[...])

    # ---- Layer 1: Linear(32 -> 32) + Tanh (MXU) -------------------------
    h = jnp.tanh(
        jnp.dot(w1_ref[...], h, preferred_element_type=jnp.float32)
        + b1_ref[...])

    # ---- Layer 2: Linear(32 -> 1), scalar bias from SMEM ----------------
    out = jnp.dot(w2_ref[...], h, preferred_element_type=jnp.float32)
    o_ref[...] = (out + b2_ref[0, 0]).astype(o_ref.dtype)


def mlp_forward(x, params, *, tb=512):
    """x: [B, 2] f32; params: list of (W [out,in], b [out]) per Linear."""
    (w0, b0), (w1, b1), (w2, b2) = params
    B, d_in = x.shape
    h1, h2, d_out = w0.shape[0], w1.shape[0], w2.shape[0]
    assert d_in == w0.shape[1] and h1 == w1.shape[1] and h2 == w2.shape[1]

    # Lane-dense batch tile: multiple of 128, at most `tb`; pad batch up.
    tile = min(tb, 128 * pl.cdiv(B, 128))
    tile = max(128, (tile // 128) * 128)
    grid = pl.cdiv(B, tile)
    B_pad = grid * tile

    # Transpose batch onto the lane axis and zero-pad to the tile boundary.
    x_t = x.T  # [d_in, B]
    if B_pad != B:
        x_t = jnp.pad(x_t, ((0, 0), (0, B_pad - B)))

    # Biases as [out, 1] so they broadcast over lanes; scalar b2 goes to SMEM.
    b0c = b0.reshape(h1, 1)
    b1c = b1.reshape(h2, 1)
    b2s = b2.reshape(1, 1)

    full = lambda i: (0, 0)   # weights/biases: resident, never re-DMA'd
    col = lambda i: (0, i)    # x / out: tile over batch (lane axis)

    cost = pl.CostEstimate(
        flops=2 * B_pad * (d_in * h1 + h1 * h2 + h2 * d_out),
        transcendentals=B_pad * (h1 + h2),
        bytes_accessed=B_pad * (d_in + d_out) * 4
        + 4 * (w0.size + w1.size + w2.size + h1 + h2 + d_out),
    )

    out_t = pl.pallas_call(
        _mlp_kernel,
        out_shape=jax.ShapeDtypeStruct((d_out, B_pad), x.dtype),
        grid_spec=pltpu.PrefetchScalarGridSpec(
            num_scalar_prefetch=0,
            grid=(grid,),
            in_specs=[
                pl.BlockSpec((d_in, tile), col),                      # x^T
                pl.BlockSpec((h1, d_in), full),                       # W0
                pl.BlockSpec((h1, 1), full),                          # b0
                pl.BlockSpec((h2, h1), full),                         # W1
                pl.BlockSpec((h2, 1), full),                          # b1
                pl.BlockSpec((d_out, h2), full),                      # W2
                pl.BlockSpec(memory_space=pltpu.MemorySpace.SMEM),    # b2
            ],
            out_specs=pl.BlockSpec((d_out, tile), col),
        ),
        compiler_params=pltpu.CompilerParams(
            dimension_semantics=("parallel",)),
        cost_estimate=cost,
    )(x_t, w0, b0c, w1, b1c, w2, b2s)

    return out_t[:, :B].T  # [B, d_out]


def init_params(key, layers):
    """Deterministic init matching nn.Linear shapes: W [out,in], b [out]."""
    params = []
    for i in range(len(layers) - 1):
        fan_in, fan_out = layers[i], layers[i + 1]
        key, kw, kb = jax.random.split(key, 3)
        bound = 1.0 / jnp.sqrt(fan_in)
        w = jax.random.uniform(kw, (fan_out, fan_in), jnp.float32, -bound, bound)
        b = jax.random.uniform(kb, (fan_out,), jnp.float32, -bound, bound)
        params.append((w, b))
    return params


def mlp_reference(x, params):
    h = x
    n = len(params)
    for i, (w, b) in enumerate(params):
        h = h @ w.T + b
        if i != n - 1:
            h = jnp.tanh(h)
    return h


if __name__ == "__main__":
    layers = [2, 32, 32, 1]   # Heat PINN: input (x, t), scalar output u
    D = 1.0                   # diffusion coefficient (unused in forward)

    params = init_params(jax.random.PRNGKey(0), layers)

    key = jax.random.PRNGKey(0)
    # Small batch (single padded tile) and a batch that exercises >1 grid step.
    for batch in (8, 640):
        key, kx = jax.random.split(key)
        x = jax.random.normal(kx, (batch, layers[0]), dtype=jnp.float32)

        out = jax.block_until_ready(mlp_forward(x, params))
        ref = mlp_reference(x, params)

        assert out.shape == (batch, layers[-1])
        assert jnp.allclose(out, ref, atol=1e-5, rtol=1e-5), (
            f"mismatch vs reference at batch={batch}")

    print("KERNEL_OK")
</pallas_src>

<mosaic_0001>
module attributes {stable_mosaic.version = 11 : i64} {
  func.func @_mlp_kernel(%arg0: i32, %arg1: memref<2x128xf32, #tpu.memory_space<vmem>>, %arg2: memref<32x2xf32, #tpu.memory_space<vmem>>, %arg3: memref<32x1xf32, #tpu.memory_space<vmem>>, %arg4: memref<32x32xf32, #tpu.memory_space<vmem>>, %arg5: memref<32x1xf32, #tpu.memory_space<vmem>>, %arg6: memref<1x32xf32, #tpu.memory_space<vmem>>, %arg7: memref<1x1xf32, #tpu.memory_space<smem>>, %arg8: memref<1x128xf32, #tpu.memory_space<vmem>>) attributes {dimension_semantics = [#tpu.dimension_semantics<parallel>], iteration_bounds = array<i64: 1>, scalar_prefetch = 0 : i64, scratch_operands = 0 : i64, tpu.core_type = #tpu.core_type<tc>, window_params = [{transform_indices = @transform_0, window_bounds = array<i64: 2, 128>}, {pipeline_mode = #tpu.pipeline_mode<synchronous>, transform_indices = @transform_1, window_bounds = array<i64: 32, 2>}, {pipeline_mode = #tpu.pipeline_mode<synchronous>, transform_indices = @transform_2, window_bounds = array<i64: 32, 1>}, {pipeline_mode = #tpu.pipeline_mode<synchronous>, transform_indices = @transform_3, window_bounds = array<i64: 32, 32>}, {pipeline_mode = #tpu.pipeline_mode<synchronous>, transform_indices = @transform_4, window_bounds = array<i64: 32, 1>}, {pipeline_mode = #tpu.pipeline_mode<synchronous>, transform_indices = @transform_5, window_bounds = array<i64: 1, 32>}, {transform_indices = @transform_6, window_bounds = array<i64: 1, 1>}, {transform_indices = @transform_7, window_bounds = array<i64: 1, 128>}]} {
    %c0 = arith.constant 0 : index
    %c0_0 = arith.constant 0 : index
    %0 = vector.load %arg2[%c0, %c0_0] : memref<32x2xf32, #tpu.memory_space<vmem>>, vector<32x1xf32>
    %c0_1 = arith.constant 0 : index
    %c0_2 = arith.constant 0 : index
    %1 = vector.load %arg1[%c0_1, %c0_2] : memref<2x128xf32, #tpu.memory_space<vmem>>, vector<1x128xf32>
    %2 = vector.broadcast %0 : vector<32x1xf32> to vector<32x128xf32>
    %3 = vector.broadcast %1 : vector<1x128xf32> to vector<32x128xf32>
    %4 = arith.mulf %2, %3 : vector<32x128xf32>
    %c0_3 = arith.constant 0 : index
    %c1 = arith.constant 1 : index
    %5 = vector.load %arg2[%c0_3, %c1] : memref<32x2xf32, #tpu.memory_space<vmem>>, vector<32x1xf32>
    %c1_4 = arith.constant 1 : index
    %c0_5 = arith.constant 0 : index
    %6 = vector.load %arg1[%c1_4, %c0_5] : memref<2x128xf32, #tpu.memory_space<vmem>>, vector<1x128xf32>
    %7 = vector.broadcast %5 : vector<32x1xf32> to vector<32x128xf32>
    %8 = vector.broadcast %6 : vector<1x128xf32> to vector<32x128xf32>
    %9 = arith.mulf %7, %8 : vector<32x128xf32>
    %10 = arith.addf %4, %9 : vector<32x128xf32>
    %c0_6 = arith.constant 0 : index
    %c0_7 = arith.constant 0 : index
    %11 = vector.load %arg3[%c0_6, %c0_7] : memref<32x1xf32, #tpu.memory_space<vmem>>, vector<32x1xf32>
    %12 = vector.broadcast %11 : vector<32x1xf32> to vector<32x128xf32>
    %13 = arith.addf %10, %12 : vector<32x128xf32>
    %14 = math.tanh %13 : vector<32x128xf32>
    %c0_8 = arith.constant 0 : index
    %c0_9 = arith.constant 0 : index
    %15 = vector.load %arg4[%c0_8, %c0_9] : memref<32x32xf32, #tpu.memory_space<vmem>>, vector<32x32xf32>
    %cst = arith.constant dense<0.000000e+00> : vector<32x128xf32>
    %16 = tpu.matmul %15, %14, %cst {dimension_numbers = #tpu.dot_dimension_numbers<[1], [0], [0], [1], [0, 0, 1, 1], [], []>} : vector<32x32xf32>, vector<32x128xf32>, vector<32x128xf32> -> vector<32x128xf32>
    %c0_10 = arith.constant 0 : index
    %c0_11 = arith.constant 0 : index
    %17 = vector.load %arg5[%c0_10, %c0_11] : memref<32x1xf32, #tpu.memory_space<vmem>>, vector<32x1xf32>
    %18 = vector.broadcast %17 : vector<32x1xf32> to vector<32x128xf32>
    %19 = arith.addf %16, %18 : vector<32x128xf32>
    %20 = math.tanh %19 : vector<32x128xf32>
    %c0_12 = arith.constant 0 : index
    %c0_13 = arith.constant 0 : index
    %21 = vector.load %arg6[%c0_12, %c0_13] : memref<1x32xf32, #tpu.memory_space<vmem>>, vector<1x32xf32>
    %cst_14 = arith.constant dense<0.000000e+00> : vector<1x128xf32>
    %22 = tpu.matmul %21, %20, %cst_14 {dimension_numbers = #tpu.dot_dimension_numbers<[1], [0], [0], [1], [0, 0, 1, 1], [], []>} : vector<1x32xf32>, vector<32x128xf32>, vector<1x128xf32> -> vector<1x128xf32>
    %c0_15 = arith.constant 0 : index
    %c0_16 = arith.constant 0 : index
    %23 = memref.load %arg7[%c0_15, %c0_16] : memref<1x1xf32, #tpu.memory_space<smem>>
    %24 = vector.broadcast %23 : f32 to vector<1x128xf32>
    %25 = arith.addf %22, %24 : vector<1x128xf32>
    %c0_17 = arith.constant 0 : index
    %c0_18 = arith.constant 0 : index
    %26 = vector.load %arg8[%c0_17, %c0_18] : memref<1x128xf32, #tpu.memory_space<vmem>>, vector<1x128xf32>
    tpu.vector_store %arg8[%c0_17, %c0_18], %25 {strides = array<i32>} : memref<1x128xf32, #tpu.memory_space<vmem>>, vector<1x128xf32>,
    return
  }
  func.func @transform_0(%arg0: i32) -> (i32, i32) {
    %c0_i32 = arith.constant 0 : i32
    %c0_i32_0 = arith.constant 0 : i32
    return %c0_i32, %arg0 : i32, i32
  }
  func.func @transform_1(%arg0: i32) -> (i32, i32) {
    %c0_i32 = arith.constant 0 : i32
    %c0_i32_0 = arith.constant 0 : i32
    %c0_i32_1 = arith.constant 0 : i32
    return %c0_i32, %c0_i32_0 : i32, i32
  }
  func.func @transform_2(%arg0: i32) -> (i32, i32) {
    %c0_i32 = arith.constant 0 : i32
    %c0_i32_0 = arith.constant 0 : i32
    %c0_i32_1 = arith.constant 0 : i32
    return %c0_i32, %c0_i32_0 : i32, i32
  }
  func.func @transform_3(%arg0: i32) -> (i32, i32) {
    %c0_i32 = arith.constant 0 : i32
    %c0_i32_0 = arith.constant 0 : i32
    %c0_i32_1 = arith.constant 0 : i32
    return %c0_i32, %c0_i32_0 : i32, i32
  }
  func.func @transform_4(%arg0: i32) -> (i32, i32) {
    %c0_i32 = arith.constant 0 : i32
    %c0_i32_0 = arith.constant 0 : i32
    %c0_i32_1 = arith.constant 0 : i32
    return %c0_i32, %c0_i32_0 : i32, i32
  }
  func.func @transform_5(%arg0: i32) -> (i32, i32) {
    %c0_i32 = arith.constant 0 : i32
    %c0_i32_0 = arith.constant 0 : i32
    %c0_i32_1 = arith.constant 0 : i32
    return %c0_i32, %c0_i32_0 : i32, i32
  }
  func.func @transform_6(%arg0: i32) -> (i32, i32) {
    %c0_i32 = arith.constant 0 : i32
    %c0_i32_0 = arith.constant 0 : i32
    %c0_i32_1 = arith.constant 0 : i32
    return %c0_i32, %c0_i32_0 : i32, i32
  }
  func.func @transform_7(%arg0: i32) -> (i32, i32) {
    %c0_i32 = arith.constant 0 : i32
    %c0_i32_0 = arith.constant 0 : i32
    return %c0_i32, %arg0 : i32, i32
  }
}

</mosaic_0001>

<bundles_post_ra>
// kernel: tpu_custom_call.1
= control target key start
LH: loop header
LB: loop body
LE: loop exit
PB: predicated region body
PF: predicated region fallthrough
CT: control target
= control target key end

     0   :  { %v438_v2 = vmov 1   ;;  %v439_v3 = vmov 0   ;;  %s551_s0 = inlined_call_operand.vmem [shape: f32[2,128], index: 0, kind: input, shape index: {}]   ;;  %s552_s1 = inlined_call_operand.vmem [shape: f32[32,2], index: 1, kind: input, shape index: {}]   ;;  %s553_s2 = inlined_call_operand.vmem [shape: f32[32,1], index: 2, kind: input, shape index: {}]   ;;  %s554_s3 = inlined_call_operand.vmem [shape: f32[32,32], index: 3, kind: input, shape index: {}]   ;;  %s555_s4 = inlined_call_operand.vmem [shape: f32[32,1], index: 4, kind: input, shape index: {}]   ;;  %s556_s5 = inlined_call_operand.vmem [shape: f32[1,32], index: 5, kind: input, shape index: {}]   ;;  %s557_s6 = inlined_call_operand.<no memory space> [shape: f32[1,1], index: 6, kind: input, shape index: {}]   ;;  %s558_s7 = inlined_call_operand.hbm [shape: f32[1,128], index: 7, kind: output, shape index: {}]  }
   0x1   :  { %v31_v0 = vld [vmem:[%s552_s1 + $0x18] sm:$0xff]  ;;  %v30_v1 = vld [vmem:[%s552_s1 + $0x10] sm:$0xff]  ;;  %393 = vset.pattern.permute.xlu0 %v438_v2  ;;  %394 = vset.pattern.permute.xlu1 %v439_v3  ;;  %v29_v4 = vld [vmem:[%s552_s1 + $0x8] sm:$0xff] }
   0x2   :  { %75 = vperm.xlu0 %393, %v31_v0   ;;  %45 = vperm.xlu1 %394, %v30_v1  }
   0x3   :  { %13 = vsyncpa [#allocation4], 0  ;;  %v28_v5 = vld [vmem:[%s552_s1] sm:$0xff]  ;;  %v93_v6 = vld [vmem:[%s553_s2 + $0x18] sm:$0xff]  ;;  %vm150_vm0 = vcmask 261120   ;;  %v440_v52 = vmov 0.0  }
   0x4   :  { %v91_v7 = vld [vmem:[%s553_s2 + $0x8] sm:$0xff]  ;;  %v129_v8 = vld [vmem:[%s555_s4 + $0x18] sm:$0xff]  ;;  %v92_v9 = vld [vmem:[%s553_s2 + $0x10] sm:$0xff]  ;;  %377 = vmatprep.subr.mxu1 %v440_v52  ;;  %vm441_vm1 = vmmov 0   ;;  %s442_s13 = smov [#allocation3]  }
   0x5   :  { %v127_v10 = vld [vmem:[%s555_s4 + $0x8] sm:$0xff]  ;;  %v90_v11 = vld [vmem:[%s553_s2] sm:$0xff]  ;;  %v128_v12 = vld [vmem:[%s555_s4 + $0x10] sm:$0xff]  ;;  %385 = vmatprep.mubr.msk.f32.mxu1 %vm441_vm1, %v440_v52  ;;  %s335_s14 = sshll.u32 %s442_s13, 4  ;;  %s336_s14 = int_to_ptr.vmem [resolvable:$true] %s335_s14 }
   0x6   :  { %395 = vset.pattern.permute.xlu1 %v438_v2  ;;  %67 = vperm.xlu0 %393, %v29_v4   ;;  %v126_v13 = vld [vmem:[%s555_s4] sm:$0xff]  ;;  %v123_v49 = vld [vmem:[%s554_s3 + $0x8] sm:$0xff]  ;;  %v124_v50 = vld [vmem:[%s554_s3 + $0x10] sm:$0xff]  ;;  %s416_s15 = scalar_lea.vmem %s336_s14, 16  ;;  %s420_s1 = scalar_lea.vmem %s336_s14, 32 }
   0x7   :  { %71 = vperm.xlu1 %395, %v30_v1   ;;  %v122_v14 = vld [vmem:[%s554_s3] sm:$0xff]  ;;  %v125_v51 = vld [vmem:[%s554_s3 + $0x18] sm:$0xff]  ;;  %p417_p0 = scmp.ne.s32.totalorder %s336_s14, %s416_s15  ;;  %p421_p1 = scmp.lt.s32.totalorder %s336_s14, %s336_s14 }
   0x8   :  { %371 = vmatprep.mubr.msk.f32.mxu0 %vm150_vm0, %v122_v14  ;;  %v344_v19 = vld [vmem:[%s551_s0 + $0x1] ss:$0 sm:$0xff]  ;;  %v343_v21 = vld [vmem:[%s551_s0] ss:$0 sm:$0xff]  ;;  %p422_p2 = scmp.lt.s32.totalorder %s420_s1, %s416_s15 }
   0xa   :  { %397 = vset.pattern.permute.xlu0 %v439_v3  ;;  %p423_p3 = por %p422_p2, %p421_p1 }
   0xb   :  { %396 = vset.pattern.permute.xlu1 %v439_v3  ;;  %50 = vperm.xlu0 %397, %v31_v0  }
   0xc   :  { %40 = vperm.xlu1 %396, %v29_v4   ;;  %v252_v4 = vld [vmem:[%s556_s5] sm:$0x1]  ;;  %p424_p4 = pnand %p423_p3, %p417_p0 }
   0xf   :  { %35 = vperm.xlu0 %397, %v28_v5  }
  0x10   :  { %111 = vperm.xlu1 %396, %v93_v6   ;;  %v254_v6 = vstv %s557_s6 }
  0x13   :  { %101 = vperm.xlu0 %397, %v91_v7  }
  0x14   :  { %398 = vset.pattern.permute.xlu1 %v438_v2 }
  0x15   :  { %63 = vperm.xlu1 %398, %v28_v5  }
  0x17   :  { %147 = vperm.xlu0 %397, %v129_v8  }
  0x19   :  { %399 = vset.pattern.permute.xlu1 %v439_v3 }
  0x1a   :  { %106 = vperm.xlu1 %399, %v92_v9  }
  0x1b   :  { %137 = vperm.xlu0 %397, %v127_v10  }
  0x1e   :  { %96 = vperm.xlu1 %399, %v90_v11  }
  0x22   :  { %142 = vperm.xlu1 %399, %v128_v12  }
  0x26   :  { %132 = vperm.xlu1 %399, %v126_v13  }
  0x7d   :  { %v46_v15 = vpop.permute.xlu1 %45  ;;  %v76_v16 = vpop.permute.xlu0 %75 }
  0x7e   :  { %v85_v20 = vmul.f32 %v344_v19, %v76_v16  ;;  %v59_v33 = vmul.f32 %v343_v21, %v46_v15 }
  0x81   :  { %v68_v17 = vpop.permute.xlu0 %67 }
  0x82   :  { %v72_v18 = vpop.permute.xlu1 %71  ;;  %v83_v30 = vmul.f32 %v344_v19, %v68_v17 }
  0x83   :  { %v84_v29 = vmul.f32 %v344_v19, %v72_v18 }
  0x85   :  { %v88_v38 = vadd.f32 %v84_v29, %v59_v33 }
  0x86   :  { %v51_v22 = vpop.permute.xlu0 %50 }
  0x87   :  { %v60_v23 = vmul.f32 %v343_v21, %v51_v22  ;;  %v41_v24 = vpop.permute.xlu1 %40 }
  0x88   :  { %v58_v31 = vmul.f32 %v343_v21, %v41_v24 }
  0x89   :  { %v89_v25 = vadd.f32 %v85_v20, %v60_v23 }
  0x8a   :  { %v36_v28 = vpop.permute.xlu0 %35  ;;  %v87_v36 = vadd.f32 %v83_v30, %v58_v31 }
  0x8b   :  { %v112_v26 = vpop.permute.xlu1 %111  ;;  %v57_v35 = vmul.f32 %v343_v21, %v36_v28 }
  0x8c   :  { %v117_v27 = vadd.f32 %v112_v26, %v89_v25 }
  0x8e   :  { %400 = vtanh.f32 %v117_v27  ;;  %v102_v34 = vpop.permute.xlu0 %101 }
  0x8f   :  { %v115_v40 = vadd.f32 %v102_v34, %v87_v36 }
  0x90   :  { %v64_v32 = vpop.permute.xlu1 %63 }
  0x91   :  { %v82_v37 = vmul.f32 %v344_v19, %v64_v32 }
  0x92   :  { %v148_v53 = vpop.permute.xlu0 %147 }
  0x93   :  { %v86_v42 = vadd.f32 %v82_v37, %v57_v35 }
  0x95   :  { %v107_v39 = vpop.permute.xlu1 %106 }
  0x96   :  { %v116_v41 = vadd.f32 %v107_v39, %v88_v38  ;;  %v138_v59 = vpop.permute.xlu0 %137 }
  0x98   :  { %402 = vtanh.f32 %v116_v41 }
  0x99   :  { %v97_v43 = vpop.permute.xlu1 %96  ;;  %404 = vtanh.f32 %v115_v40 }
  0x9a   :  { %v114_v44 = vadd.f32 %v97_v43, %v86_v42 }
  0x9b   :  { %v401_v45 = vpop.eup %400 }
  0x9c   :  { %406 = vtanh.f32 %v114_v44  ;;  %363 = vmatprep.subr.mxu0 %v401_v45 }
  0x9d   :  { %364 = vmatpush3.msra.mxu0 %v401_v45  ;;  %v143_v55 = vpop.permute.xlu1 %142 }
  0xa1   :  { %v133_v63 = vpop.permute.xlu1 %132 }
  0xa5   :  { %v403_v46 = vpop.eup %402 }
  0xa6   :  { %365 = vmatprep.subr.mxu0 %v403_v46  ;;  %v405_v47 = vpop.eup %404 }
  0xa7   :  { %366 = vmatpush3.msra.mxu0 %v403_v46 }
  0xa8   :  { %367 = vmatprep.subr.mxu0 %v405_v47 }
  0xa9   :  { %v407_v48 = vpop.eup %406  ;;  %368 = vmatpush3.msra.mxu0 %v405_v47 }
  0xaa   :  { %369 = vmatprep.subr.mxu0 %v407_v48 }
  0xab   :  { %370 = vmatpush3.msra.mxu0 %v407_v48 }
  0xac   :  { %372 = vmatmul.mubr.msk.f32.vlgmr.msra.gmra.mxu0 %vm150_vm0, %v123_v49 }
  0xad   :  { %374 = vmatprep.mubr.msk.f32.mxu0 %vm150_vm0, %v124_v50 }
  0xb0   :  { %375 = vmatmul.mubr.msk.f32.gmra.mxu0 %vm150_vm0, %v125_v51 }
 0x16c   :  { %v373_v54 = vpop.f32.mrf.mxu0 }
 0x16d   :  { %v235_v61 = vadd.f32 %v373_v54, %v138_v59 }
 0x16e   :  { %v229_v56 = vpop.f32.mrf.mxu0 }
 0x16f   :  { %v230_v0 = vadd.f32 %v229_v56, %v133_v63 }
 0x170   :  { %v376_v57 = vpop.f32.mrf.mxu0 }
 0x171   :  { %v245_v58 = vadd.f32 %v376_v57, %v148_v53 }
 0x172   :  { %v239_v60 = vpop.f32.mrf.mxu0 }
 0x173   :  { %408 = vtanh.f32 %v245_v58  ;;  %v240_v62 = vadd.f32 %v239_v60, %v143_v55 }
 0x175   :  { %410 = vtanh.f32 %v240_v62 }
 0x176   :  { %412 = vtanh.f32 %v235_v61 }
 0x177   :  { %414 = vtanh.f32 %v230_v0 }
 0x180   :  { %v409_v1 = vpop.eup %408 }
 0x181   :  { %378 = vmatpush3.msra.mxu1 %v409_v1 }
 0x182   :  { %v411_v2 = vpop.eup %410  ;;  %379 = vmatprep.subr.mxu1 %v440_v52 }
 0x183   :  { %380 = vmatpush3.msra.mxu1 %v411_v2  ;;  %v413_v3 = vpop.eup %412 }
 0x184   :  { %381 = vmatprep.subr.mxu1 %v440_v52  ;;  %v415_v5 = vpop.eup %414 }
 0x185   :  { %382 = vmatpush3.msra.mxu1 %v413_v3 }
 0x186   :  { %383 = vmatprep.subr.mxu1 %v440_v52 }
 0x187   :  { %384 = vmatpush3.msra.mxu1 %v415_v5 }
 0x188   :  { %386 = vmatmul.mubr.msk.f32.vlgmr.msra.gmra.mxu1 %vm150_vm0, %v252_v4 }
 0x248   :  { %v324_v7 = vpop.f32.mrf.mxu1 }
 0x249   :  { %v325_v8 = vadd.f32 %v324_v7, %v254_v6 }
 0x24a   :  { %v387_v9 = vpop.f32.mrf.mxu1 }
 0x24b   :  { %328 = vst [vmem:[#allocation3] sm:$0x1] %v325_v8 }
 0x24c   :  { %427 = shalt.err (!%p424_p4)
}
 0x24d   :  { %338 = dma.vmem_to_hbm [thread:$0]  %s336_s14, 16, %s558_s7, [#allocation4]  }
 0x24e   :  { %436 = dma.done.wait [#allocation4], 16  }
 0x24f   :  { %437 = vsyncadd [#allocation4], 4294967280 }
 0x250   :  { %342 = vsyncpa [#allocation4], 1 }

</bundles_post_ra>
